<compile_context>
chip_gen: v6e
topology: v6e:2x2x1
jax: 0.10.0
libtpu: 0.0.40
codegen_flags: <defaults>
</compile_context>

<pallas_src>
import functools

import jax
import jax.numpy as jnp
from jax.experimental import pallas as pl
from jax.experimental.pallas import tpu as pltpu


# --------------------------------- kernel ----------------------------------
def _make_render_kernel(use_noise):
    def render_kernel(*refs):
        if use_noise:
            (feat_ref, occ_ref, noise_ref, zvals_ref, dists_ref,
             featmap_ref, rgb_ref, da_ref) = refs
        else:
            (feat_ref, occ_ref, zvals_ref, dists_ref,
             featmap_ref, rgb_ref, da_ref) = refs
            noise_ref = None

        occ = occ_ref[0].astype(jnp.float32)           # (Z, TN)
        if use_noise:
            occ = occ + noise_ref[0].astype(jnp.float32)
        zv = zvals_ref[...]                            # (Z, 1)
        dists = dists_ref[...]                         # (Z, 1)

        Z, TN = occ.shape
        C = feat_ref.shape[1]

        # raw2alpha.  s = -relu(occ+noise)*dists is the exact per-sample
        # log-transmittance, so alpha = 1 - exp(s) and the exclusive cumprod
        # of (1 - alpha) is exp(exclusive_cumsum(s)).  (The reference's +1e-10
        # floor only matters after a fully opaque sample, where weights ~0.)
        sigma = jnp.maximum(occ, 0.0)
        s = -sigma * dists                             # (Z, TN)
        alpha = 1.0 - jnp.exp(s)                       # (Z, TN)

        if Z > 1:
            # Exclusive cumsum of s along Z (sublane axis): Hillis-Steele scan
            # built from pltpu.roll (XLU slot, otherwise idle here) + a single
            # VALU select each.  No concatenate => no (Z,TN) VMEM copies.
            # Row-index iota hoisted once (JAX does not CSE broadcast_in_dim).
            row_idx = jax.lax.broadcasted_iota(jnp.int32, (Z, 1), 0)
            ex = jnp.where(row_idx >= 1, pltpu.roll(s, shift=1, axis=0), 0.0)
            off = 1
            while off < Z:
                ex = ex + jnp.where(row_idx >= off,
                                    pltpu.roll(ex, shift=off, axis=0), 0.0)
                off *= 2
            # TODO(synk): if a bundle profile ever shows this scan exposed
            # (large Z, tiny C), it can move to the idle MXU as a matmul with
            # a strict-lower-triangular 0/1 matrix (f32 acc, precision=HIGHEST).
            weights = alpha * jnp.exp(ex)              # (Z, TN)
        else:
            weights = alpha

        # Per-channel accumulation: only one (Z, TN) product live at a time,
        # never a (C, Z, TN) temporary (halves in-kernel VMEM pressure).
        for c in range(C):
            fc = feat_ref[0, c].astype(jnp.float32)                 # (Z, TN)
            fm = jnp.sum(weights * fc, axis=0, keepdims=True)       # (1, TN)
            featmap_ref[0, c:c + 1, :] = fm
            # sigmoid(x) - 0.5 == 0.5 * tanh(x / 2): one EUP op, no divide.
            rgb_ref[0, c:c + 1, :] = 0.5 * jnp.tanh(0.5 * fm)

        # Direct row stores (no concat): row 0 = depth_e, row 1 = acc_e.
        da_ref[0, 0:1, :] = jnp.sum(weights * zv, axis=0, keepdims=True)
        da_ref[0, 1:2, :] = jnp.clip(
            jnp.sum(weights, axis=0, keepdims=True), 0.0, 1.0)

    return render_kernel


# ------------------------------ tiling policy ------------------------------
def _vmem_capacity_bytes():
    try:
        info = pltpu.get_tpu_info()
        for name in ("vmem_capacity_bytes", "vmem_size_bytes", "vmem_bytes"):
            cap = getattr(info, name, None)
            if cap:
                return int(cap)
    except Exception:
        pass
    return 64 * 2 ** 20   # conservative (v7x per-TensorCore)


def _per_lane_bytes(C, Z, feat_itemsize, occ_itemsize, use_noise):
    # Double-buffered in/out blocks + in-kernel f32 temporaries, per ray.
    noise_bytes = 4 * Z if use_noise else 0
    blocks = 2 * (C * Z * feat_itemsize + Z * occ_itemsize + noise_bytes
                  + (2 * C + 2) * 4)
    temps = 6 * Z * 4        # occ/s/alpha/ex/rolled/weights-class temporaries
    return blocks + temps


def _select_tile_n(P, C, Z, feat_itemsize, occ_itemsize, use_noise,
                   vmem_bytes, batch):
    LANE = 128
    if P % LANE != 0:
        return P              # tiny / irregular spatial extent: one block/batch
    per_lane = _per_lane_bytes(C, Z, feat_itemsize, occ_itemsize, use_noise)
    budget = vmem_bytes // 2                  # leave slack for compiler scratch
    cap = max(LANE, (budget // per_lane) // LANE * LANE)
    # Target a ~2 MiB feat block per grid step (the dominant HBM stream), so
    # the ~0.35us/step pipeline overhead is amortized even for small C*Z.
    target = max(LANE, ((2 << 20) // max(C * Z * feat_itemsize, 1)) // LANE * LANE)
    want = min(cap, target, P)
    tile = LANE
    for cand in range(LANE, want + 1, LANE):
        if P % cand == 0:
            tile = cand
    # Megacore: keep the total step count even so both TensorCores get equal work.
    if (batch * (P // tile)) % 2 == 1 and tile % (2 * LANE) == 0:
        tile //= 2
    return tile


# --------------------------------- wrapper ---------------------------------
@functools.partial(jax.jit, static_argnames=("tile_n", "vmem_limit"))
def _render_impl(feat, occ, noise, z_dist, *, tile_n, vmem_limit):
    B, C, Z, Y, X = feat.shape
    P = Y * X
    use_noise = noise is not None

    # Free reshapes only -- the kernel consumes the natural contiguous layouts.
    feat_k = feat.reshape(B, C, Z, P)
    occ_k = occ.reshape(B, Z, P)
    noise_k = None if noise is None else noise.reshape(B, Z, P)

    zv = z_dist.reshape(Z, 1).astype(jnp.float32)
    dists = jnp.concatenate(
        [z_dist[1:] - z_dist[:-1],
         jnp.full((1,), 10000000000.0, dtype=z_dist.dtype)],
        axis=0).reshape(Z, 1).astype(jnp.float32)

    grid = (B, P // tile_n)

    in_specs = [
        pl.BlockSpec((1, C, Z, tile_n), lambda b, j: (b, 0, 0, j)),
        pl.BlockSpec((1, Z, tile_n), lambda b, j: (b, 0, j)),
    ]
    inputs = [feat_k, occ_k]
    if use_noise:
        in_specs.append(pl.BlockSpec((1, Z, tile_n), lambda b, j: (b, 0, j)))
        inputs.append(noise_k)
    in_specs += [
        pl.BlockSpec((Z, 1), lambda b, j: (0, 0)),
        pl.BlockSpec((Z, 1), lambda b, j: (0, 0)),
    ]
    inputs += [zv, dists]

    feat_map, rgb_map, da_map = pl.pallas_call(
        _make_render_kernel(use_noise),
        out_shape=(
            jax.ShapeDtypeStruct((B, C, P), jnp.float32),   # feat_e (flat)
            jax.ShapeDtypeStruct((B, C, P), jnp.float32),   # rgb_e  (flat)
            jax.ShapeDtypeStruct((B, 2, P), jnp.float32),   # [depth_e; acc_e]
        ),
        grid_spec=pltpu.PrefetchScalarGridSpec(
            num_scalar_prefetch=0,
            grid=grid,
            in_specs=in_specs,
            out_specs=(
                pl.BlockSpec((1, C, tile_n), lambda b, j: (b, 0, j)),
                pl.BlockSpec((1, C, tile_n), lambda b, j: (b, 0, j)),
                pl.BlockSpec((1, 2, tile_n), lambda b, j: (b, 0, j)),
            ),
        ),
        compiler_params=pltpu.CompilerParams(
            dimension_semantics=("parallel", "parallel"),
            vmem_limit_bytes=vmem_limit),
    )(*inputs)

    # Free reshapes back to the PyTorch NCHW outputs.
    feat_e = feat_map.reshape(B, C, Y, X)
    rgb_e = rgb_map.reshape(B, C, Y, X)
    acc_e = da_map[:, 1:2, :].reshape(B, 1, Y, X)
    # depth_e (= da_map[:, 0:1]) is computed for parity with the module; it
    # only feeds the depth-smoothness loss which requires rgb_g/valid.
    # TODO(synk): rgb l1 loss, depth smoothness loss and summ_writer summaries
    # need rgb_g / valid / hyp coefficients; total_loss stays 0 as in the
    # rgb_g=None path of the PyTorch module.
    # TODO(synk): optionally generate noise in-kernel via pltpu.prng_seed /
    # pltpu.prng_random_bits to drop the (B, Z, P) HBM read entirely (changes
    # the random stream vs. a host-generated draw).
    total_loss = jnp.float32(0.0)
    return total_loss, rgb_e, feat_e, acc_e


def rendernet_forward(feat, occ, z_dist, noise=None):
    """RenderNet.forward (rgb_g=None / summ_writer=None path).

    feat:   (B, C, Z, Y, X) float32 or bfloat16
    occ:    (B, 1, Z, Y, X) float32 or bfloat16
    z_dist: (Z,)            float32
    noise:  (B, Z, Y, X)    float32 or None -- the torch.randn(occ.shape)*std
                                               draw, passed deterministically.
    Returns (total_loss, rgb_e, feat_e, acc_e).
    """
    B, C, Z, Y, X = feat.shape
    P = Y * X
    use_noise = noise is not None

    feat_itemsize = jnp.dtype(feat.dtype).itemsize
    occ_itemsize = jnp.dtype(occ.dtype).itemsize
    vmem_cap = _vmem_capacity_bytes()

    tile_n = _select_tile_n(P, C, Z, feat_itemsize, occ_itemsize, use_noise,
                            vmem_cap, B)

    # VMEM limit from the actual footprint (double-buffered blocks + temps),
    # with headroom, clamped under the physical per-core capacity.
    est = tile_n * _per_lane_bytes(C, Z, feat_itemsize, occ_itemsize,
                                   use_noise) + 4 * 4 * Z + (1 << 20)
    vmem_limit = int(min(vmem_cap * 9 // 10, max(16 * 2 ** 20, 2 * est)))
    vmem_limit = max(vmem_limit, est)

    return _render_impl(feat, occ, noise, z_dist,
                        tile_n=int(tile_n), vmem_limit=int(vmem_limit))


# ---------------- pure-JAX reference (mirrors the PyTorch code) -------------
def raw2outputs_ref(raw_feat, raw_occ, z_vals, noise):
    dists = z_vals[:, 1:] - z_vals[:, :-1]
    dists = jnp.concatenate(
        [dists, 10000000000.0 * jnp.ones_like(dists[:, 0:1])], axis=1)
    alpha = 1.0 - jnp.exp(-jax.nn.relu(raw_occ + noise) * dists)
    w = jnp.cumprod(1.0 - alpha + 1e-10, axis=-1)
    weights = alpha * jnp.concatenate(
        [jnp.ones_like(w[:, 0:1]), w[:, :-1]], axis=1)
    feat_map = jnp.sum(weights[..., None] * raw_feat, axis=-2)
    depth_map = jnp.sum(weights * z_vals, axis=-1)
    acc_map = jnp.clip(jnp.sum(weights, -1), 0.0, 1.0)
    return feat_map, acc_map, weights, depth_map


def rendernet_forward_ref(feat, occ, z_dist, noise):
    B, C, Z, Y, X = feat.shape
    N = B * Y * X
    feat_r = jnp.transpose(feat, (0, 3, 4, 2, 1)).reshape(N, Z, C)
    occ_r = jnp.transpose(occ, (0, 3, 4, 2, 1)).reshape(N, Z)
    noise_r = jnp.transpose(noise, (0, 2, 3, 1)).reshape(N, Z)
    z_r = jnp.tile(z_dist.reshape(1, -1), (N, 1))
    feat_map, acc_map, _, _ = raw2outputs_ref(feat_r, occ_r, z_r, noise_r)
    feat_e = feat_map.reshape(B, Y, X, C).transpose(0, 3, 1, 2)
    acc_e = acc_map.reshape(B, Y, X, 1).transpose(0, 3, 1, 2)
    rgb_e = jax.nn.sigmoid(feat_e) - 0.5
    return rgb_e, feat_e, acc_e


if __name__ == "__main__":
    B, C, Z, Y, X = 2, 4, 8, 16, 16
    key = jax.random.PRNGKey(0)
    k1, k2, k3 = jax.random.split(key, 3)
    feat = jax.random.normal(k1, (B, C, Z, Y, X), dtype=jnp.float32)
    occ = jax.random.normal(k2, (B, 1, Z, Y, X), dtype=jnp.float32)
    z_dist = jnp.linspace(1.0, 9.0, Z).astype(jnp.float32)
    # raw_noise_std = 0.1 (default in raw2outputs); deterministic draw in-script.
    noise = jax.random.normal(k3, (B, Z, Y, X), dtype=jnp.float32) * 0.1

    total_loss, rgb_e, feat_e, acc_e = rendernet_forward(feat, occ, z_dist, noise)
    jax.block_until_ready((total_loss, rgb_e, feat_e, acc_e))

    rgb_r, feat_r, acc_r = rendernet_forward_ref(feat, occ, z_dist, noise)
    assert feat_e.shape == (B, C, Y, X) and acc_e.shape == (B, 1, Y, X)
    assert jnp.allclose(feat_e, feat_r, atol=1e-4, rtol=1e-4), "feat_e mismatch"
    assert jnp.allclose(rgb_e, rgb_r, atol=1e-4, rtol=1e-4), "rgb_e mismatch"
    assert jnp.allclose(acc_e, acc_r, atol=1e-4, rtol=1e-4), "acc_e mismatch"
    assert float(total_loss) == 0.0

    # Exercise the no-noise specialization (raw_noise_std == 0 path) too.
    zero_noise = jnp.zeros((B, Z, Y, X), jnp.float32)
    _, rgb0, feat0, acc0 = rendernet_forward(feat, occ, z_dist, None)
    jax.block_until_ready((rgb0, feat0, acc0))
    rgb0_r, feat0_r, acc0_r = rendernet_forward_ref(feat, occ, z_dist, zero_noise)
    assert jnp.allclose(feat0, feat0_r, atol=1e-4, rtol=1e-4), "no-noise feat_e mismatch"
    assert jnp.allclose(acc0, acc0_r, atol=1e-4, rtol=1e-4), "no-noise acc_e mismatch"

    print("KERNEL_OK")
</pallas_src>

<mosaic_0001>
module attributes {stable_mosaic.version = 11 : i64} {
  func.func @render_kernel(%arg0: i32, %arg1: i32, %arg2: memref<1x4x8x256xf32, #tpu.memory_space<vmem>>, %arg3: memref<1x8x256xf32, #tpu.memory_space<vmem>>, %arg4: memref<1x8x256xf32, #tpu.memory_space<vmem>>, %arg5: memref<8x1xf32, #tpu.memory_space<vmem>>, %arg6: memref<8x1xf32, #tpu.memory_space<vmem>>, %arg7: memref<1x4x256xf32, #tpu.memory_space<vmem>>, %arg8: memref<1x4x256xf32, #tpu.memory_space<vmem>>, %arg9: memref<1x2x256xf32, #tpu.memory_space<vmem>>) attributes {dimension_semantics = [#tpu.dimension_semantics<parallel>, #tpu.dimension_semantics<parallel>], iteration_bounds = array<i64: 2, 1>, scalar_prefetch = 0 : i64, scratch_operands = 0 : i64, tpu.core_type = #tpu.core_type<tc>, window_params = [{transform_indices = @transform_0, window_bounds = array<i64: 1, 4, 8, 256>}, {transform_indices = @transform_1, window_bounds = array<i64: 1, 8, 256>}, {transform_indices = @transform_2, window_bounds = array<i64: 1, 8, 256>}, {pipeline_mode = #tpu.pipeline_mode<synchronous>, transform_indices = @transform_3, window_bounds = array<i64: 8, 1>}, {pipeline_mode = #tpu.pipeline_mode<synchronous>, transform_indices = @transform_4, window_bounds = array<i64: 8, 1>}, {transform_indices = @transform_5, window_bounds = array<i64: 1, 4, 256>}, {transform_indices = @transform_6, window_bounds = array<i64: 1, 4, 256>}, {transform_indices = @transform_7, window_bounds = array<i64: 1, 2, 256>}]} {
    %c0 = arith.constant 0 : index
    %c0_0 = arith.constant 0 : index
    %c0_1 = arith.constant 0 : index
    %0 = vector.load %arg3[%c0, %c0_0, %c0_1] : memref<1x8x256xf32, #tpu.memory_space<vmem>>, vector<1x8x256xf32>
    %1 = vector.shape_cast %0 : vector<1x8x256xf32> to vector<8x256xf32>
    %c0_2 = arith.constant 0 : index
    %c0_3 = arith.constant 0 : index
    %c0_4 = arith.constant 0 : index
    %2 = vector.load %arg4[%c0_2, %c0_3, %c0_4] : memref<1x8x256xf32, #tpu.memory_space<vmem>>, vector<1x8x256xf32>
    %3 = vector.shape_cast %2 : vector<1x8x256xf32> to vector<8x256xf32>
    %4 = arith.addf %1, %3 : vector<8x256xf32>
    %c0_5 = arith.constant 0 : index
    %c0_6 = arith.constant 0 : index
    %5 = vector.load %arg5[%c0_5, %c0_6] : memref<8x1xf32, #tpu.memory_space<vmem>>, vector<8x1xf32>
    %c0_7 = arith.constant 0 : index
    %c0_8 = arith.constant 0 : index
    %6 = vector.load %arg6[%c0_7, %c0_8] : memref<8x1xf32, #tpu.memory_space<vmem>>, vector<8x1xf32>
    %cst = arith.constant 0.000000e+00 : f32
    %7 = vector.broadcast %cst : f32 to vector<8x256xf32>
    %8 = arith.maximumf %4, %7 : vector<8x256xf32>
    %cst_9 = arith.constant 0.000000e+00 : f32
    %9 = vector.broadcast %cst_9 : f32 to vector<8x256xf32>
    %10 = arith.subf %9, %8 : vector<8x256xf32>
    %11 = vector.broadcast %6 : vector<8x1xf32> to vector<8x256xf32>
    %12 = arith.mulf %10, %11 : vector<8x256xf32>
    %13 = math.exp %12 : vector<8x256xf32>
    %cst_10 = arith.constant 1.000000e+00 : f32
    %14 = vector.broadcast %cst_10 : f32 to vector<8x256xf32>
    %15 = arith.subf %14, %13 : vector<8x256xf32>
    %16 = tpu.iota {dimensions = array<i32: 0>} : vector<8x1xi32>
    %c1_i32 = arith.constant 1 : i32
    %17 = vector.broadcast %c1_i32 : i32 to vector<8x1xi32>
    %18 = arith.cmpi sge, %16, %17 : vector<8x1xi32>
    %c1_i32_11 = arith.constant 1 : i32
    %19 = tpu.dynamic_rotate %12 by %c1_i32_11 dim 0 : vector<8x256xf32>, i32 -> vector<8x256xf32>
    %cst_12 = arith.constant 0.000000e+00 : f32
    %20 = vector.shape_cast %18 : vector<8x1xi1> to vector<8x1xi1>
    %21 = vector.broadcast %20 : vector<8x1xi1> to vector<8x256xi1>
    %22 = vector.broadcast %cst_12 : f32 to vector<8x256xf32>
    %23 = arith.select %21, %19, %22 : vector<8x256xi1>, vector<8x256xf32>
    %c1_i32_13 = arith.constant 1 : i32
    %24 = vector.broadcast %c1_i32_13 : i32 to vector<8x1xi32>
    %25 = arith.cmpi sge, %16, %24 : vector<8x1xi32>
    %c1_i32_14 = arith.constant 1 : i32
    %26 = tpu.dynamic_rotate %23 by %c1_i32_14 dim 0 : vector<8x256xf32>, i32 -> vector<8x256xf32>
    %cst_15 = arith.constant 0.000000e+00 : f32
    %27 = vector.shape_cast %25 : vector<8x1xi1> to vector<8x1xi1>
    %28 = vector.broadcast %27 : vector<8x1xi1> to vector<8x256xi1>
    %29 = vector.broadcast %cst_15 : f32 to vector<8x256xf32>
    %30 = arith.select %28, %26, %29 : vector<8x256xi1>, vector<8x256xf32>
    %31 = arith.addf %23, %30 : vector<8x256xf32>
    %c2_i32 = arith.constant 2 : i32
    %32 = vector.broadcast %c2_i32 : i32 to vector<8x1xi32>
    %33 = arith.cmpi sge, %16, %32 : vector<8x1xi32>
    %c2_i32_16 = arith.constant 2 : i32
    %34 = tpu.dynamic_rotate %31 by %c2_i32_16 dim 0 : vector<8x256xf32>, i32 -> vector<8x256xf32>
    %cst_17 = arith.constant 0.000000e+00 : f32
    %35 = vector.shape_cast %33 : vector<8x1xi1> to vector<8x1xi1>
    %36 = vector.broadcast %35 : vector<8x1xi1> to vector<8x256xi1>
    %37 = vector.broadcast %cst_17 : f32 to vector<8x256xf32>
    %38 = arith.select %36, %34, %37 : vector<8x256xi1>, vector<8x256xf32>
    %39 = arith.addf %31, %38 : vector<8x256xf32>
    %c4_i32 = arith.constant 4 : i32
    %40 = vector.broadcast %c4_i32 : i32 to vector<8x1xi32>
    %41 = arith.cmpi sge, %16, %40 : vector<8x1xi32>
    %c4_i32_18 = arith.constant 4 : i32
    %42 = tpu.dynamic_rotate %39 by %c4_i32_18 dim 0 : vector<8x256xf32>, i32 -> vector<8x256xf32>
    %cst_19 = arith.constant 0.000000e+00 : f32
    %43 = vector.shape_cast %41 : vector<8x1xi1> to vector<8x1xi1>
    %44 = vector.broadcast %43 : vector<8x1xi1> to vector<8x256xi1>
    %45 = vector.broadcast %cst_19 : f32 to vector<8x256xf32>
    %46 = arith.select %44, %42, %45 : vector<8x256xi1>, vector<8x256xf32>
    %47 = arith.addf %39, %46 : vector<8x256xf32>
    %48 = math.exp %47 : vector<8x256xf32>
    %49 = arith.mulf %15, %48 : vector<8x256xf32>
    %c0_20 = arith.constant 0 : index
    %c0_21 = arith.constant 0 : index
    %c0_22 = arith.constant 0 : index
    %c0_23 = arith.constant 0 : index
    %50 = vector.load %arg2[%c0_20, %c0_21, %c0_22, %c0_23] : memref<1x4x8x256xf32, #tpu.memory_space<vmem>>, vector<1x1x8x256xf32>
    %51 = vector.shape_cast %50 : vector<1x1x8x256xf32> to vector<8x256xf32>
    %52 = arith.mulf %49, %51 : vector<8x256xf32>
    %cst_24 = arith.constant dense<0.000000e+00> : vector<256xf32>
    %53 = vector.multi_reduction <add>, %52, %cst_24 [0] : vector<8x256xf32> to vector<256xf32>
    %54 = vector.shape_cast %53 : vector<256xf32> to vector<1x256xf32>
    %c0_25 = arith.constant 0 : index
    %c0_26 = arith.constant 0 : index
    %c0_27 = arith.constant 0 : index
    %55 = vector.load %arg7[%c0_25, %c0_26, %c0_27] : memref<1x4x256xf32, #tpu.memory_space<vmem>>, vector<1x1x256xf32>
    %56 = vector.shape_cast %55 : vector<1x1x256xf32> to vector<1x256xf32>
    %57 = vector.shape_cast %54 : vector<1x256xf32> to vector<1x1x256xf32>
    tpu.vector_store %arg7[%c0_25, %c0_26, %c0_27], %57 {strides = array<i32>} : memref<1x4x256xf32, #tpu.memory_space<vmem>>, vector<1x1x256xf32>,
    %cst_28 = arith.constant 5.000000e-01 : f32
    %58 = vector.broadcast %cst_28 : f32 to vector<1x256xf32>
    %59 = arith.mulf %58, %54 : vector<1x256xf32>
    %60 = math.tanh %59 : vector<1x256xf32>
    %cst_29 = arith.constant 5.000000e-01 : f32
    %61 = vector.broadcast %cst_29 : f32 to vector<1x256xf32>
    %62 = arith.mulf %61, %60 : vector<1x256xf32>
    %c0_30 = arith.constant 0 : index
    %c0_31 = arith.constant 0 : index
    %c0_32 = arith.constant 0 : index
    %63 = vector.load %arg8[%c0_30, %c0_31, %c0_32] : memref<1x4x256xf32, #tpu.memory_space<vmem>>, vector<1x1x256xf32>
    %64 = vector.shape_cast %63 : vector<1x1x256xf32> to vector<1x256xf32>
    %65 = vector.shape_cast %62 : vector<1x256xf32> to vector<1x1x256xf32>
    tpu.vector_store %arg8[%c0_30, %c0_31, %c0_32], %65 {strides = array<i32>} : memref<1x4x256xf32, #tpu.memory_space<vmem>>, vector<1x1x256xf32>,
    %c0_33 = arith.constant 0 : index
    %c1 = arith.constant 1 : index
    %c0_34 = arith.constant 0 : index
    %c0_35 = arith.constant 0 : index
    %66 = vector.load %arg2[%c0_33, %c1, %c0_34, %c0_35] : memref<1x4x8x256xf32, #tpu.memory_space<vmem>>, vector<1x1x8x256xf32>
    %67 = vector.shape_cast %66 : vector<1x1x8x256xf32> to vector<8x256xf32>
    %68 = arith.mulf %49, %67 : vector<8x256xf32>
    %cst_36 = arith.constant dense<0.000000e+00> : vector<256xf32>
    %69 = vector.multi_reduction <add>, %68, %cst_36 [0] : vector<8x256xf32> to vector<256xf32>
    %70 = vector.shape_cast %69 : vector<256xf32> to vector<1x256xf32>
    %c0_37 = arith.constant 0 : index
    %c1_38 = arith.constant 1 : index
    %c0_39 = arith.constant 0 : index
    %71 = vector.load %arg7[%c0_37, %c1_38, %c0_39] : memref<1x4x256xf32, #tpu.memory_space<vmem>>, vector<1x1x256xf32>
    %72 = vector.shape_cast %71 : vector<1x1x256xf32> to vector<1x256xf32>
    %73 = vector.shape_cast %70 : vector<1x256xf32> to vector<1x1x256xf32>
    tpu.vector_store %arg7[%c0_37, %c1_38, %c0_39], %73 {strides = array<i32>} : memref<1x4x256xf32, #tpu.memory_space<vmem>>, vector<1x1x256xf32>,
    %cst_40 = arith.constant 5.000000e-01 : f32
    %74 = vector.broadcast %cst_40 : f32 to vector<1x256xf32>
    %75 = arith.mulf %74, %70 : vector<1x256xf32>
    %76 = math.tanh %75 : vector<1x256xf32>
    %cst_41 = arith.constant 5.000000e-01 : f32
    %77 = vector.broadcast %cst_41 : f32 to vector<1x256xf32>
    %78 = arith.mulf %77, %76 : vector<1x256xf32>
    %c0_42 = arith.constant 0 : index
    %c1_43 = arith.constant 1 : index
    %c0_44 = arith.constant 0 : index
    %79 = vector.load %arg8[%c0_42, %c1_43, %c0_44] : memref<1x4x256xf32, #tpu.memory_space<vmem>>, vector<1x1x256xf32>
    %80 = vector.shape_cast %79 : vector<1x1x256xf32> to vector<1x256xf32>
    %81 = vector.shape_cast %78 : vector<1x256xf32> to vector<1x1x256xf32>
    tpu.vector_store %arg8[%c0_42, %c1_43, %c0_44], %81 {strides = array<i32>} : memref<1x4x256xf32, #tpu.memory_space<vmem>>, vector<1x1x256xf32>,
    %c0_45 = arith.constant 0 : index
    %c2 = arith.constant 2 : index
    %c0_46 = arith.constant 0 : index
    %c0_47 = arith.constant 0 : index
    %82 = vector.load %arg2[%c0_45, %c2, %c0_46, %c0_47] : memref<1x4x8x256xf32, #tpu.memory_space<vmem>>, vector<1x1x8x256xf32>
    %83 = vector.shape_cast %82 : vector<1x1x8x256xf32> to vector<8x256xf32>
    %84 = arith.mulf %49, %83 : vector<8x256xf32>
    %cst_48 = arith.constant dense<0.000000e+00> : vector<256xf32>
    %85 = vector.multi_reduction <add>, %84, %cst_48 [0] : vector<8x256xf32> to vector<256xf32>
    %86 = vector.shape_cast %85 : vector<256xf32> to vector<1x256xf32>
    %c0_49 = arith.constant 0 : index
    %c2_50 = arith.constant 2 : index
    %c0_51 = arith.constant 0 : index
    %87 = vector.load %arg7[%c0_49, %c2_50, %c0_51] : memref<1x4x256xf32, #tpu.memory_space<vmem>>, vector<1x1x256xf32>
    %88 = vector.shape_cast %87 : vector<1x1x256xf32> to vector<1x256xf32>
    %89 = vector.shape_cast %86 : vector<1x256xf32> to vector<1x1x256xf32>
    tpu.vector_store %arg7[%c0_49, %c2_50, %c0_51], %89 {strides = array<i32>} : memref<1x4x256xf32, #tpu.memory_space<vmem>>, vector<1x1x256xf32>,
    %cst_52 = arith.constant 5.000000e-01 : f32
    %90 = vector.broadcast %cst_52 : f32 to vector<1x256xf32>
    %91 = arith.mulf %90, %86 : vector<1x256xf32>
    %92 = math.tanh %91 : vector<1x256xf32>
    %cst_53 = arith.constant 5.000000e-01 : f32
    %93 = vector.broadcast %cst_53 : f32 to vector<1x256xf32>
    %94 = arith.mulf %93, %92 : vector<1x256xf32>
    %c0_54 = arith.constant 0 : index
    %c2_55 = arith.constant 2 : index
    %c0_56 = arith.constant 0 : index
    %95 = vector.load %arg8[%c0_54, %c2_55, %c0_56] : memref<1x4x256xf32, #tpu.memory_space<vmem>>, vector<1x1x256xf32>
    %96 = vector.shape_cast %95 : vector<1x1x256xf32> to vector<1x256xf32>
    %97 = vector.shape_cast %94 : vector<1x256xf32> to vector<1x1x256xf32>
    tpu.vector_store %arg8[%c0_54, %c2_55, %c0_56], %97 {strides = array<i32>} : memref<1x4x256xf32, #tpu.memory_space<vmem>>, vector<1x1x256xf32>,
    %c0_57 = arith.constant 0 : index
    %c3 = arith.constant 3 : index
    %c0_58 = arith.constant 0 : index
    %c0_59 = arith.constant 0 : index
    %98 = vector.load %arg2[%c0_57, %c3, %c0_58, %c0_59] : memref<1x4x8x256xf32, #tpu.memory_space<vmem>>, vector<1x1x8x256xf32>
    %99 = vector.shape_cast %98 : vector<1x1x8x256xf32> to vector<8x256xf32>
    %100 = arith.mulf %49, %99 : vector<8x256xf32>
    %cst_60 = arith.constant dense<0.000000e+00> : vector<256xf32>
    %101 = vector.multi_reduction <add>, %100, %cst_60 [0] : vector<8x256xf32> to vector<256xf32>
    %102 = vector.shape_cast %101 : vector<256xf32> to vector<1x256xf32>
    %c0_61 = arith.constant 0 : index
    %c3_62 = arith.constant 3 : index
    %c0_63 = arith.constant 0 : index
    %103 = vector.load %arg7[%c0_61, %c3_62, %c0_63] : memref<1x4x256xf32, #tpu.memory_space<vmem>>, vector<1x1x256xf32>
    %104 = vector.shape_cast %103 : vector<1x1x256xf32> to vector<1x256xf32>
    %105 = vector.shape_cast %102 : vector<1x256xf32> to vector<1x1x256xf32>
    tpu.vector_store %arg7[%c0_61, %c3_62, %c0_63], %105 {strides = array<i32>} : memref<1x4x256xf32, #tpu.memory_space<vmem>>, vector<1x1x256xf32>,
    %cst_64 = arith.constant 5.000000e-01 : f32
    %106 = vector.broadcast %cst_64 : f32 to vector<1x256xf32>
    %107 = arith.mulf %106, %102 : vector<1x256xf32>
    %108 = math.tanh %107 : vector<1x256xf32>
    %cst_65 = arith.constant 5.000000e-01 : f32
    %109 = vector.broadcast %cst_65 : f32 to vector<1x256xf32>
    %110 = arith.mulf %109, %108 : vector<1x256xf32>
    %c0_66 = arith.constant 0 : index
    %c3_67 = arith.constant 3 : index
    %c0_68 = arith.constant 0 : index
    %111 = vector.load %arg8[%c0_66, %c3_67, %c0_68] : memref<1x4x256xf32, #tpu.memory_space<vmem>>, vector<1x1x256xf32>
    %112 = vector.shape_cast %111 : vector<1x1x256xf32> to vector<1x256xf32>
    %113 = vector.shape_cast %110 : vector<1x256xf32> to vector<1x1x256xf32>
    tpu.vector_store %arg8[%c0_66, %c3_67, %c0_68], %113 {strides = array<i32>} : memref<1x4x256xf32, #tpu.memory_space<vmem>>, vector<1x1x256xf32>,
    %114 = vector.broadcast %5 : vector<8x1xf32> to vector<8x256xf32>
    %115 = arith.mulf %49, %114 : vector<8x256xf32>
    %cst_69 = arith.constant dense<0.000000e+00> : vector<256xf32>
    %116 = vector.multi_reduction <add>, %115, %cst_69 [0] : vector<8x256xf32> to vector<256xf32>
    %117 = vector.shape_cast %116 : vector<256xf32> to vector<1x256xf32>
    %c0_70 = arith.constant 0 : index
    %c0_71 = arith.constant 0 : index
    %c0_72 = arith.constant 0 : index
    %118 = vector.load %arg9[%c0_70, %c0_71, %c0_72] : memref<1x2x256xf32, #tpu.memory_space<vmem>>, vector<1x1x256xf32>
    %119 = vector.shape_cast %118 : vector<1x1x256xf32> to vector<1x256xf32>
    %120 = vector.shape_cast %117 : vector<1x256xf32> to vector<1x1x256xf32>
    tpu.vector_store %arg9[%c0_70, %c0_71, %c0_72], %120 {strides = array<i32>} : memref<1x2x256xf32, #tpu.memory_space<vmem>>, vector<1x1x256xf32>,
    %cst_73 = arith.constant dense<0.000000e+00> : vector<256xf32>
    %121 = vector.multi_reduction <add>, %49, %cst_73 [0] : vector<8x256xf32> to vector<256xf32>
    %122 = vector.shape_cast %121 : vector<256xf32> to vector<1x256xf32>
    %cst_74 = arith.constant 0.000000e+00 : f32
    %cst_75 = arith.constant 1.000000e+00 : f32
    %123 = vector.broadcast %cst_74 : f32 to vector<1x256xf32>
    %124 = arith.maximumf %123, %122 : vector<1x256xf32>
    %125 = vector.broadcast %cst_75 : f32 to vector<1x256xf32>
    %126 = arith.minimumf %125, %124 : vector<1x256xf32>
    %c0_76 = arith.constant 0 : index
    %c1_77 = arith.constant 1 : index
    %c0_78 = arith.constant 0 : index
    %127 = vector.load %arg9[%c0_76, %c1_77, %c0_78] : memref<1x2x256xf32, #tpu.memory_space<vmem>>, vector<1x1x256xf32>
    %128 = vector.shape_cast %127 : vector<1x1x256xf32> to vector<1x256xf32>
    %129 = vector.shape_cast %126 : vector<1x256xf32> to vector<1x1x256xf32>
    tpu.vector_store %arg9[%c0_76, %c1_77, %c0_78], %129 {strides = array<i32>} : memref<1x2x256xf32, #tpu.memory_space<vmem>>, vector<1x1x256xf32>,
    return
  }
  func.func @transform_0(%arg0: i32, %arg1: i32) -> (i32, i32, i32, i32) {
    %c0_i32 = arith.constant 0 : i32
    %c0_i32_0 = arith.constant 0 : i32
    %c0_i32_1 = arith.constant 0 : i32
    return %arg0, %c0_i32, %c0_i32_0, %arg1 : i32, i32, i32, i32
  }
  func.func @transform_1(%arg0: i32, %arg1: i32) -> (i32, i32, i32) {
    %c0_i32 = arith.constant 0 : i32
    %c0_i32_0 = arith.constant 0 : i32
    return %arg0, %c0_i32, %arg1 : i32, i32, i32
  }
  func.func @transform_2(%arg0: i32, %arg1: i32) -> (i32, i32, i32) {
    %c0_i32 = arith.constant 0 : i32
    %c0_i32_0 = arith.constant 0 : i32
    return %arg0, %c0_i32, %arg1 : i32, i32, i32
  }
  func.func @transform_3(%arg0: i32, %arg1: i32) -> (i32, i32) {
    %c0_i32 = arith.constant 0 : i32
    %c0_i32_0 = arith.constant 0 : i32
    %c0_i32_1 = arith.constant 0 : i32
    return %c0_i32, %c0_i32_0 : i32, i32
  }
  func.func @transform_4(%arg0: i32, %arg1: i32) -> (i32, i32) {
    %c0_i32 = arith.constant 0 : i32
    %c0_i32_0 = arith.constant 0 : i32
    %c0_i32_1 = arith.constant 0 : i32
    return %c0_i32, %c0_i32_0 : i32, i32
  }
  func.func @transform_5(%arg0: i32, %arg1: i32) -> (i32, i32, i32) {
    %c0_i32 = arith.constant 0 : i32
    %c0_i32_0 = arith.constant 0 : i32
    return %arg0, %c0_i32, %arg1 : i32, i32, i32
  }
  func.func @transform_6(%arg0: i32, %arg1: i32) -> (i32, i32, i32) {
    %c0_i32 = arith.constant 0 : i32
    %c0_i32_0 = arith.constant 0 : i32
    return %arg0, %c0_i32, %arg1 : i32, i32, i32
  }
  func.func @transform_7(%arg0: i32, %arg1: i32) -> (i32, i32, i32) {
    %c0_i32 = arith.constant 0 : i32
    %c0_i32_0 = arith.constant 0 : i32
    return %arg0, %c0_i32, %arg1 : i32, i32, i32
  }
}

</mosaic_0001>

<bundles_post_ra>
// kernel: _render_impl.1
= control target key start
LH: loop header
LB: loop body
LE: loop exit
PB: predicated region body
PF: predicated region fallthrough
CT: control target
= control target key end

     0   :  { %s1206_s24 = smov 0   ;;  %s1208_s25 = smov 0   ;;  %s1333_s0 = inlined_call_operand.vmem [shape: f32[2,4,8,256], index: 0, kind: input, shape index: {}]   ;;  %s1334_s1 = inlined_call_operand.vmem [shape: f32[2,8,256], index: 1, kind: input, shape index: {}]   ;;  %s1335_s2 = inlined_call_operand.vmem [shape: f32[2,8,256], index: 2, kind: input, shape index: {}]   ;;  %s1336_s3 = inlined_call_operand.vmem [shape: f32[8,1], index: 3, kind: input, shape index: {}]   ;;  %s1337_s4 = inlined_call_operand.vmem [shape: f32[8,1], index: 4, kind: input, shape index: {}]   ;;  %s1338_s5 = inlined_call_operand.vmem [shape: f32[2,4,256], index: 5, kind: output, shape index: {0}]   ;;  %s1339_s6 = inlined_call_operand.vmem [shape: f32[2,4,256], index: 6, kind: output, shape index: {1}]   ;;  %s1340_s7 = inlined_call_operand.vmem [shape: f32[2,2,256], index: 7, kind: output, shape index: {2}]  }
   0x1   :  { %s1210_s26 = smov 0  }
   0x2 LB: > { %s30_s27 = sadd.s32 1, %s1158_s25  ;;  %p1055_p0 = scmp.ge.s32.totalorder %s1162_s26, 1  ;;  %s1162_s26 = sphi %s1210_s26, %s18_s26   ;;  %s1158_s25 = sphi %s1208_s25, %s1344_s25   ;;  %s1154_s24 = sphi %s1206_s24, %s1343_s24  }
   0x3   : > { %p32_p1 = scmp.ge.s32.totalorder %s30_s27, 2  ;;  %p301_p2 = scmp.lt.s32.totalorder %s1162_s26, 3 }
   0x5   : > { %s1346_s27 = smov (%p32_p1, %s30_s27), 0  ;;  %p302_p3 = pnand %p1055_p0, %p301_p2 }
   0x6   : > { %p378_p4 = scmp.lt.s32.totalorder (!%p302_p3), %s1154_s24, 1 }
   0x7   : > { %305 = sbr.rel (%p302_p3) target bundleno = 222 (0xde), region = 40 }
   0xc   : > { %v444_v0 = vld [vmem:[%s1337_s4] sm:$0xff]  ;;  %v1164_v1 = vmov 0   ;;  %s1348_s24 = smov (!%p378_p4, %s1154_s24), 1  ;;  %v462_v11 = vlaneseq  ;;  %v1165_v44 = vmov 1966171168  }
   0xd   : > { %1115 = vset.pattern.permute.xlu0 %v1164_v1  ;;  %v443_v2 = vld [vmem:[%s1336_s3] sm:$0xff]  ;;  %s1084_s9 = sshll.u32 %s1348_s24, 4  ;;  %s1083_s16 = sshll.u32 %s1348_s24, 6  ;;  %v521_v45 = vunpack.c.l.s4 %v1165_v44 }
   0xe   : > { %451 = vperm.xlu0 %1115, %v444_v0   ;;  %s395_s12 = scalar_lea.vmem %s1334_s1, %s1084_s9  ;;  %s405_s15 = scalar_lea.vmem %s1335_s2, %s1084_s9  ;;  %v463_v14 = vshrl.u32 %v462_v11, 7  ;;  %vm1259_vm3 = vcmp.lt.s32.totalorder %v462_v11, 256 }
   0xf   : > { %v437_v3 = vld [vmem:[%s395_s12] sm:$0xff]  ;;  %v438_v4 = vld [vmem:[%s395_s12 + $0x8] sm:$0xff]  ;;  %s385_s19 = scalar_lea.vmem %s1333_s0, %s1083_s16  ;;  %v522_v48 = vunpack.c.0.s8 %v521_v45  ;;  %s1086_s20 = sshll.u32 %s1348_s24, 3 }
  0x10   : > { %v439_v5 = vld [vmem:[%s405_s15] sm:$0xff]  ;;  %v440_v6 = vld [vmem:[%s405_s15 + $0x8] sm:$0xff]  ;;  %vm464_vm0 = vcmp.ge.s32.totalorder %v463_v14, 1  ;;  %vm477_vm1 = vcmp.ge.s32.totalorder %v463_v14, 2  ;;  %vm486_vm2 = vcmp.ge.s32.totalorder %v463_v14, 4  ;;  %v1068_v54 = vld [vmem:[%s385_s19 + $0x10] sm:$0xff]  ;;  %s415_s23 = scalar_lea.vmem %s1338_s5, %s1086_s20  ;;  %s425_s30 = scalar_lea.vmem %s1339_s6, %s1086_s20 }
  0x11   : > { %v441_v7 = vadd.f32 %v439_v5, %v437_v3  ;;  %v442_v8 = vadd.f32 %v440_v6, %v438_v4  ;;  %v501_v50 = vld [vmem:[%s385_s19] sm:$0xff]  ;;  %v502_v51 = vld [vmem:[%s385_s19 + $0x8] sm:$0xff]  ;;  %v1076_v56 = vld [vmem:[%s385_s19 + $0x30] sm:$0xff]  ;;  %v1246_v62 = vsub.s32 %v522_v48, %v463_v14  ;;  %s1088_s8 = sshll.u32 %s1348_s24, 2 }
  0x12   : > { %756 = vperm.xlu0 %1115, %v443_v2   ;;  %v1072_v55 = vld [vmem:[%s385_s19 + $0x20] sm:$0xff]  ;;  %v1069_v59 = vld [vmem:[%s385_s19 + $0x18] sm:$0xff]  ;;  %v1073_v60 = vld [vmem:[%s385_s19 + $0x28] sm:$0xff]  ;;  %s435_s10 = scalar_lea.vmem %s1340_s7, %s1088_s8 }
  0x13   : > { %v445_v9 = vmax.f32 %v441_v7, 0.0  ;;  %v446_v10 = vmax.f32 %v442_v8, 0.0  ;;  %v1077_v61 = vld [vmem:[%s385_s19 + $0x38] sm:$0xff] }
  0x15   : > { %v447_v12 = vsub.f32 0.0, %v445_v9  ;;  %v448_v13 = vsub.f32 0.0, %v446_v10 }
  0x89   : > { %v452_v15 = vpop.permute.xlu0 %451 }
  0x8a   : > { %v454_v16 = vmul.f32 %v452_v15, %v447_v12  ;;  %v455_v17 = vmul.f32 %v452_v15, %v448_v13 }
  0x8c   : > { %v465_v18 = vrot.slane %v454_v16, 7  ;;  %v466_v19 = vrot.slane %v455_v17, 7  ;;  %v456_v34 = vmul.f32 1.442695, %v454_v16  ;;  %v458_v35 = vmul.f32 1.442695, %v455_v17 }
  0x8e   : > { %v469_v20 = vsel %vm464_vm0, %v465_v18, 0.0  ;;  %v470_v21 = vsel %vm464_vm0, %v466_v19, 0.0  ;;  %1116 = vpow2.f32 %v456_v34 }
  0x8f   : > { %v471_v22 = vrot.slane %v469_v20, 7  ;;  %v472_v23 = vrot.slane %v470_v21, 7  ;;  %1118 = vpow2.f32 %v458_v35 }
  0x91   : > { %v473_v24 = vsel %vm464_vm0, %v471_v22, 0.0  ;;  %v474_v25 = vsel %vm464_vm0, %v472_v23, 0.0 }
  0x92   : > { %v475_v26 = vadd.f32 %v473_v24, %v469_v20  ;;  %v476_v27 = vadd.f32 %v474_v25, %v470_v21 }
  0x94   : > { %v478_v28 = vrot.slane %v475_v26, 6  ;;  %v479_v29 = vrot.slane %v476_v27, 6 }
  0x96   : > { %v482_v30 = vsel %vm477_vm1, %v478_v28, 0.0  ;;  %v483_v31 = vsel %vm477_vm1, %v479_v29, 0.0 }
  0x97   : > { %v484_v32 = vadd.f32 %v482_v30, %v475_v26  ;;  %v485_v33 = vadd.f32 %v483_v31, %v476_v27 }
  0x99   : > { %v487_v36 = vrot.slane %v484_v32, 4  ;;  %v488_v37 = vrot.slane %v485_v33, 4 }
  0x9b   : > { %v491_v38 = vsel %vm486_vm2, %v487_v36, 0.0  ;;  %v492_v39 = vsel %vm486_vm2, %v488_v37, 0.0  ;;  %v1117_v46 = vpop.eup %1116 }
  0x9c   : > { %v493_v40 = vadd.f32 %v491_v38, %v484_v32  ;;  %v494_v41 = vadd.f32 %v492_v39, %v485_v33  ;;  %v1119_v47 = vpop.eup %1118  ;;  %v460_v49 = vsub.f32 1.0, %v1117_v46 }
  0x9d   : > { %v461_v53 = vsub.f32 1.0, %v1119_v47 }
  0x9e   : > { %v495_v42 = vmul.f32 1.442695, %v493_v40  ;;  %v497_v43 = vmul.f32 1.442695, %v494_v41 }
  0xa0   : > { %1120 = vpow2.f32 %v495_v42 }
  0xa1   : > { %1122 = vpow2.f32 %v497_v43 }
  0xad   : > { %v1121_v52 = vpop.eup %1120 }
  0xae   : > { %v1123_v57 = vpop.eup %1122  ;;  %v1244_v58 = vmul.f32 %v1121_v52, %v460_v49 }
  0xaf   : > { %v1248_v63 = vmul.f32 %v1123_v57, %v461_v53 }
  0xb0   : > { %v503_v0 = vmul.f32 %v501_v50, %v1244_v58  ;;  %v568_v1 = vmul.f32 %v1068_v54, %v1244_v58  ;;  %v631_v2 = vmul.f32 %v1072_v55, %v1244_v58  ;;  %v694_v3 = vmul.f32 %v1076_v56, %v1244_v58 }
  0xb1   : > { %v504_v4 = vmul.f32 %v502_v51, %v1248_v63  ;;  %v569_v5 = vmul.f32 %v1069_v59, %v1248_v63  ;;  %v632_v6 = vmul.f32 %v1073_v60, %v1248_v63  ;;  %v695_v7 = vmul.f32 %v1077_v61, %v1248_v63 }
  0xb2   : > { %v505_v8 = vrot.slane %v503_v0, 4  ;;  %v570_v9 = vrot.slane %v568_v1, 4  ;;  %v633_v10 = vrot.slane %v631_v2, 4  ;;  %v696_v12 = vrot.slane %v694_v3, 4 }
  0xb3   : > { %v511_v13 = vrot.slane %v504_v4, 4  ;;  %v576_v14 = vrot.slane %v569_v5, 4  ;;  %v639_v15 = vrot.slane %v632_v6, 4  ;;  %v702_v16 = vrot.slane %v695_v7, 4 }
  0xb4   : > { %v506_v17 = vadd.f32 %v505_v8, %v503_v0  ;;  %v571_v18 = vadd.f32 %v570_v9, %v568_v1  ;;  %v634_v19 = vadd.f32 %v633_v10, %v631_v2  ;;  %v697_v20 = vadd.f32 %v696_v12, %v694_v3 }
  0xb5   : > { %v512_v21 = vadd.f32 %v511_v13, %v504_v4  ;;  %v577_v22 = vadd.f32 %v576_v14, %v569_v5  ;;  %v640_v23 = vadd.f32 %v639_v15, %v632_v6  ;;  %v703_v24 = vadd.f32 %v702_v16, %v695_v7 }
  0xb6   : > { %v507_v25 = vrot.slane %v506_v17, 2  ;;  %v572_v26 = vrot.slane %v571_v18, 2  ;;  %v635_v27 = vrot.slane %v634_v19, 2  ;;  %v698_v28 = vrot.slane %v697_v20, 2 }
  0xb7   : > { %v513_v29 = vrot.slane %v512_v21, 2  ;;  %v578_v30 = vrot.slane %v577_v22, 2  ;;  %v641_v31 = vrot.slane %v640_v23, 2  ;;  %v704_v32 = vrot.slane %v703_v24, 2 }
  0xb8   : > { %v508_v33 = vadd.f32 %v507_v25, %v506_v17  ;;  %v573_v34 = vadd.f32 %v572_v26, %v571_v18  ;;  %v636_v35 = vadd.f32 %v635_v27, %v634_v19  ;;  %v699_v36 = vadd.f32 %v698_v28, %v697_v20  ;;  %v757_v20 = vpop.permute.xlu0 %756 }
  0xb9   : > { %v514_v37 = vadd.f32 %v513_v29, %v512_v21  ;;  %v579_v38 = vadd.f32 %v578_v30, %v577_v22  ;;  %v642_v39 = vadd.f32 %v641_v31, %v640_v23  ;;  %v705_v40 = vadd.f32 %v704_v32, %v703_v24 }
  0xba   : > { %v509_v42 = vrot.slane %v508_v33, 1  ;;  %v574_v43 = vrot.slane %v573_v34, 1  ;;  %v637_v44 = vrot.slane %v636_v35, 1  ;;  %v700_v45 = vrot.slane %v699_v36, 1 }
  0xbb   : > { %v515_v46 = vrot.slane %v514_v37, 1  ;;  %v580_v47 = vrot.slane %v579_v38, 1  ;;  %v643_v48 = vrot.slane %v642_v39, 1  ;;  %v706_v49 = vrot.slane %v705_v40, 1 }
  0xbc   : > { %v510_v50 = vadd.f32 %v509_v42, %v508_v33  ;;  %v575_v51 = vadd.f32 %v574_v43, %v573_v34  ;;  %v638_v52 = vadd.f32 %v637_v44, %v636_v35  ;;  %v701_v53 = vadd.f32 %v700_v45, %v699_v36 }
  0xbd   : > { %v516_v54 = vadd.f32 %v515_v46, %v514_v37  ;;  %v581_v55 = vadd.f32 %v580_v47, %v579_v38  ;;  %v644_v56 = vadd.f32 %v643_v48, %v642_v39  ;;  %v707_v11 = vadd.f32 %v706_v49, %v705_v40 }
  0xbe   : > { %v540_v57 = vmul.f32 0.5, %v510_v50  ;;  %v602_v59 = vmul.f32 0.5, %v575_v51  ;;  %v665_v60 = vmul.f32 0.5, %v638_v52  ;;  %v728_v61 = vmul.f32 0.5, %v701_v53 }
  0xbf   : > { %v519_v0 = vcombine.low %v510_v50, %v516_v54  ;;  %v541_v1 = vmul.f32 0.5, %v516_v54  ;;  %v584_v2 = vcombine.low %v575_v51, %v581_v55  ;;  %v603_v3 = vmul.f32 0.5, %v581_v55 }
  0xc0   : > { %1124 = vtanh.f32 %v540_v57  ;;  %v647_v4 = vcombine.low %v638_v52, %v644_v56  ;;  %v666_v5 = vmul.f32 0.5, %v644_v56  ;;  %v710_v6 = vcombine.low %v701_v53, %v707_v11 }
  0xc1   : > { %v526_v7 = vrot.slane %v519_v0, %v1246_v62  ;;  %1126 = vtanh.f32 %v541_v1  ;;  %v591_v8 = vrot.slane %v584_v2, %v1246_v62  ;;  %v729_v9 = vmul.f32 0.5, %v707_v11 }
  0xc2   : > { %1128 = vtanh.f32 %v602_v59  ;;  %v654_v10 = vrot.slane %v647_v4, %v1246_v62  ;;  %v717_v12 = vrot.slane %v710_v6, %v1246_v62  ;;  %v792_v13 = vrot.slane %v1244_v58, 4 }
  0xc3   : > { %v533_v14 = vrot.slane %v526_v7, %v1246_v62  ;;  %v598_v15 = vrot.slane %v591_v8, %v1246_v62  ;;  %1130 = vtanh.f32 %v603_v3  ;;  %v798_v16 = vrot.slane %v1248_v63, 4 }
  0xc4   : > { %v661_v17 = vrot.slane %v654_v10, %v1246_v62  ;;  %1132 = vtanh.f32 %v665_v60  ;;  %v724_v18 = vrot.slane %v717_v12, %v1246_v62  ;;  %v793_v19 = vadd.f32 %v792_v13, %v1244_v58 }
  0xc5   : > { %539 = vst.msk [vmem:[%s415_s23] ss:$4 sm:$0x3] %vm1259_vm3, %v533_v14  ;;  %1070 = vst.msk [vmem:[%s415_s23 + $0x1] ss:$4 sm:$0x3] %vm1259_vm3, %v598_v15  ;;  %1134 = vtanh.f32 %v666_v5  ;;  %v799_v21 = vadd.f32 %v798_v16, %v1248_v63  ;;  %v759_v22 = vmul.f32 %v757_v20, %v1244_v58  ;;  %v760_v23 = vmul.f32 %v757_v20, %v1248_v63 }
  0xc6   : > { %1074 = vst.msk [vmem:[%s415_s23 + $0x2] ss:$4 sm:$0x3] %vm1259_vm3, %v661_v17  ;;  %1078 = vst.msk [vmem:[%s415_s23 + $0x3] ss:$4 sm:$0x3] %vm1259_vm3, %v724_v18  ;;  %1136 = vtanh.f32 %v728_v61 }
  0xc7   : > { %v794_v24 = vrot.slane %v793_v19, 2  ;;  %1138 = vtanh.f32 %v729_v9  ;;  %v800_v25 = vrot.slane %v799_v21, 2  ;;  %v761_v26 = vrot.slane %v759_v22, 4 }
  0xc8   : > { %v767_v27 = vrot.slane %v760_v23, 4 }
  0xc9   : > { %v795_v28 = vadd.f32 %v794_v24, %v793_v19  ;;  %v762_v29 = vadd.f32 %v761_v26, %v759_v22  ;;  %v801_v31 = vadd.f32 %v800_v25, %v799_v21 }
  0xca   : > { %v768_v30 = vadd.f32 %v767_v27, %v760_v23 }
  0xcb   : > { %v796_v32 = vrot.slane %v795_v28, 1  ;;  %v763_v58 = vrot.slane %v762_v29, 2  ;;  %v802_v63 = vrot.slane %v801_v31, 1 }
  0xcc   : > { %v769_v33 = vrot.slane %v768_v30, 2 }
  0xcd   : > { %v797_v34 = vadd.f32 %v796_v32, %v795_v28  ;;  %v1125_v35 = vpop.eup %1124  ;;  %v764_v36 = vadd.f32 %v763_v58, %v762_v29  ;;  %v803_v38 = vadd.f32 %v802_v63, %v801_v31 }
  0xce   : > { %v770_v37 = vadd.f32 %v769_v33, %v768_v30  ;;  %v1127_v39 = vpop.eup %1126  ;;  %v544_v40 = vmul.f32 0.5, %v1125_v35 }
  0xcf   : > { %v804_v42 = vmax.f32 %v797_v34, 0.0  ;;  %v1129_v43 = vpop.eup %1128  ;;  %v545_v44 = vmul.f32 0.5, %v1127_v39  ;;  %v765_v45 = vrot.slane %v764_v36, 1  ;;  %v805_v47 = vmax.f32 %v803_v38, 0.0 }
  0xd0   : > { %v771_v46 = vrot.slane %v770_v37, 1  ;;  %v1131_v48 = vpop.eup %1130  ;;  %v606_v49 = vmul.f32 0.5, %v1129_v43 }
  0xd1   : > { %v806_v50 = vmin.f32 %v804_v42, 1.0  ;;  %v1133_v51 = vpop.eup %1132  ;;  %v548_v52 = vcombine.low %v544_v40, %v545_v44  ;;  %v607_v53 = vmul.f32 0.5, %v1131_v48  ;;  %v766_v54 = vadd.f32 %v765_v45, %v764_v36 }
  0xd2   : > { %v772_v55 = vadd.f32 %v771_v46, %v770_v37  ;;  %v1135_v56 = vpop.eup %1134  ;;  %v669_v11 = vmul.f32 0.5, %v1133_v51  ;;  %v807_v57 = vmin.f32 %v805_v47, 1.0 }
  0xd3   : > { %v1137_v59 = vpop.eup %1136  ;;  %v555_v60 = vrot.slane %v548_v52, %v1246_v62  ;;  %v610_v61 = vcombine.low %v606_v49, %v607_v53  ;;  %v670_v0 = vmul.f32 0.5, %v1135_v56 }
  0xd4   : > { %v775_v1 = vcombine.low %v766_v54, %v772_v55  ;;  %v1139_v2 = vpop.eup %1138  ;;  %v732_v3 = vmul.f32 0.5, %v1137_v59  ;;  %v810_v4 = vcombine.low %v806_v50, %v807_v57 }
  0xd5   : > { %v562_v5 = vrot.slane %v555_v60, %v1246_v62  ;;  %v617_v6 = vrot.slane %v610_v61, %v1246_v62  ;;  %v673_v7 = vcombine.low %v669_v11, %v670_v0  ;;  %v733_v8 = vmul.f32 0.5, %v1139_v2 }
  0xd6   : > { %v782_v9 = vrot.slane %v775_v1, %v1246_v62  ;;  %v817_v10 = vrot.slane %v810_v4, %v1246_v62 }
  0xd7   : > { %564 = vst.msk [vmem:[%s425_s30] ss:$4 sm:$0x3] %vm1259_vm3, %v562_v5  ;;  %v624_v12 = vrot.slane %v617_v6, %v1246_v62  ;;  %v680_v13 = vrot.slane %v673_v7, %v1246_v62  ;;  %v736_v14 = vcombine.low %v732_v3, %v733_v8 }
  0xd8   : > { %v789_v15 = vrot.slane %v782_v9, %v1246_v62  ;;  %v824_v16 = vrot.slane %v817_v10, %v1246_v62 }
  0xd9   : > { %1071 = vst.msk [vmem:[%s425_s30 + $0x1] ss:$4 sm:$0x3] %vm1259_vm3, %v624_v12  ;;  %v687_v17 = vrot.slane %v680_v13, %v1246_v62  ;;  %v743_v18 = vrot.slane %v736_v14, %v1246_v62 }
  0xda   : > { %791 = vst.msk [vmem:[%s435_s10] ss:$2 sm:$0x3] %vm1259_vm3, %v789_v15  ;;  %1080 = vst.msk [vmem:[%s435_s10 + $0x1] ss:$2 sm:$0x3] %vm1259_vm3, %v824_v16 }
  0xdb   : > { %1075 = vst.msk [vmem:[%s425_s30 + $0x2] ss:$4 sm:$0x3] %vm1259_vm3, %v687_v17  ;;  %v750_v19 = vrot.slane %v743_v18, %v1246_v62 }
  0xdd   : > { %1079 = vst.msk [vmem:[%s425_s30 + $0x3] ss:$4 sm:$0x3] %vm1259_vm3, %v750_v19 }
  0xde PF: > { %s18_s26 = sadd.s32 1, %s1162_s26   ;;  %s1343_s24 = smov %s1158_s25 }
  0xdf   : > { %p15_p5 = scmp.ge.s32.totalorder %s18_s26, 4   ;;  %s1344_s25 = smov %s1346_s27 }
  0xe1   :  { %17 = sbr.rel (!%p15_p5) target bundleno = 2 (0x2), region = 110 }

</bundles_post_ra>
